<compile_context>
chip_gen: v5e
topology: v5e:2x2
jax: 0.10.0
libtpu: 0.0.40
codegen_flags: <defaults>
</compile_context>

<pallas_src>
import jax
import jax.numpy as jnp
from jax import lax
from jax.experimental import pallas as pl
from jax.experimental.pallas import tpu as pltpu

_MAX_TB = 2048  # rows per grid step upper bound (VMEM footprint ~3 MB, tiny)


# ----------------------------------------------------------------------------
# Kernel
# ----------------------------------------------------------------------------
def _critic_kernel(x_ref, a_ref,
                   w1_ref, b1_ref,
                   w2o_ref, w2a_ref, b2_ref,
                   w3_ref, b3_ref,
                   out_ref):
    cd = w1_ref.dtype  # MXU compute dtype (bf16); accumulation stays f32

    # obs_fc: ReLU(x @ W1 + b1).  x arrives f32; cast on the VPU (free slack).
    h1 = jnp.dot(x_ref[...].astype(cd), w1_ref[...],
                 preferred_element_type=jnp.float32)
    h1 = jnp.maximum(h1 + b1_ref[...], 0.0)

    # out_fc[0]: ReLU(concat([h1, a]) @ W2 + b2)
    #          == h1 @ W2_obs + a @ W2_act + b2   (concat split algebraically)
    z = jnp.dot(h1.astype(cd), w2o_ref[...], preferred_element_type=jnp.float32)
    z = z + jnp.dot(a_ref[...].astype(cd), w2a_ref[...],
                    preferred_element_type=jnp.float32)
    h2 = jnp.maximum(z + b2_ref[...], 0.0)

    # out_fc[2]: q = h2 @ w3 + b3, computed transposed (A . B^T form) so the
    # result is a lane-dense (1, TB) row rather than a masked (TB, 1) column.
    q = lax.dot_general(w3_ref[...], h2.astype(cd),
                        dimension_numbers=(((1,), (1,)), ((), ())),
                        preferred_element_type=jnp.float32)
    out_ref[...] = (q + b3_ref[...]).reshape(out_ref.shape).astype(out_ref.dtype)


# ----------------------------------------------------------------------------
# Wrapper
# ----------------------------------------------------------------------------
def _round_up(x, m):
    return ((x + m - 1) // m) * m


def _tc_per_chip():
    try:
        kind = jax.devices()[0].device_kind.lower()
    except Exception:
        return 1
    return 2 if ("v7" in kind or "7x" in kind) else 1


def _pick_tile(batch):
    """One grid step on single-TC chips; >=2 'parallel' steps on v7x (2 TCs)."""
    if _tc_per_chip() >= 2 and batch >= 512:
        return min(_round_up(pl.cdiv(batch, 2), 128), _MAX_TB)
    if batch <= _MAX_TB:
        return batch  # single step, block == full array -> no padding needed
    return _MAX_TB


def prepare_kernel_params(params, compute_dtype=jnp.bfloat16):
    """One-time parameter prep (do at weight-sync time, NOT per forward):
    bf16 weight casts for the MXU, W2 already split into obs/act halves,
    W3 stored as a (1, h2) row, biases as f32 rows."""
    w1t, b1, w2o_t, w2a_t, b2, w3t, b3 = params
    cast = lambda t: t.astype(compute_dtype)
    return (cast(w1t),
            b1.reshape(1, -1).astype(jnp.float32),
            cast(w2o_t),
            cast(w2a_t),
            b2.reshape(1, -1).astype(jnp.float32),
            cast(w3t).reshape(1, -1),            # (h2, 1) -> (1, h2) row
            b3.reshape(1, 1).astype(jnp.float32))


def ddpg_critic_forward(x, a, kparams, *, tile_b=None):
    """x: (B, obs_size) f32, a: (B, act_size) f32,
    kparams: prepare_kernel_params(...)  ->  (B, 1) f32 Q values."""
    w1, b1, w2o, w2a, b2, w3, b3 = kparams
    B, obs_size = x.shape
    act_size = a.shape[1]
    h1 = w1.shape[1]
    h2 = w2o.shape[1]

    TB = tile_b if tile_b is not None else _pick_tile(B)
    n_tiles = pl.cdiv(B, TB)
    Bp = n_tiles * TB
    if Bp != B:
        # Only hit when B needs multiple tiles and isn't tile-aligned.
        x = jnp.pad(x, ((0, Bp - B), (0, 0)))
        a = jnp.pad(a, ((0, Bp - B), (0, 0)))

    batch_spec = lambda cols: pl.BlockSpec((TB, cols), lambda i: (i, 0))
    const2 = lambda shape: pl.BlockSpec(shape, lambda i: (0, 0))

    flops = 2 * B * (obs_size * h1 + (h1 + act_size) * h2 + h2)
    bytes_accessed = (B * (obs_size + act_size + 1) * 4                 # x, a, q
                      + (obs_size * h1 + (h1 + act_size) * h2 + h2) * 2  # bf16 W
                      + (h1 + h2 + 1) * 4)                               # biases

    out = pl.pallas_call(
        _critic_kernel,
        out_shape=jax.ShapeDtypeStruct((n_tiles, 1, TB), jnp.float32),
        grid=(n_tiles,),
        in_specs=[
            batch_spec(obs_size),            # x tile (f32; cast in-kernel)
            batch_spec(act_size),            # a tile (f32; cast in-kernel)
            const2((obs_size, h1)),          # W1^T     (bf16, VMEM-resident)
            const2((1, h1)),                 # b1
            const2((h1, h2)),                # W2_obs^T
            const2((act_size, h2)),          # W2_act^T
            const2((1, h2)),                 # b2
            const2((1, h2)),                 # w3 row
            const2((1, 1)),                  # b3
        ],
        out_specs=pl.BlockSpec((1, 1, TB), lambda i: (i, 0, 0)),
        compiler_params=pltpu.CompilerParams(
            dimension_semantics=("parallel",)),
        cost_estimate=pl.CostEstimate(flops=flops, transcendentals=0,
                                      bytes_accessed=bytes_accessed),
    )(x, a, w1, b1, w2o, w2a, b2, w3, b3)

    q = out.reshape(Bp)
    if Bp != B:
        q = q[:B]
    return q.reshape(B, 1)


# ----------------------------------------------------------------------------
# Init + pure-JAX reference (mirrors the PyTorch module)
# ----------------------------------------------------------------------------
def _orthogonal(key, shape, gain):
    """Deterministic orthogonal init (nn.init.orthogonal_ semantics)."""
    rows, cols = shape
    n = max(rows, cols)
    m = jax.random.normal(key, (n, min(rows, cols)), dtype=jnp.float32)
    q, r = jnp.linalg.qr(m)
    q = q * jnp.sign(jnp.diag(r))
    q = q[:rows, :cols] if rows >= cols else q[:cols, :rows].T
    return gain * q


def init_params(key, obs_size, act_size, h1=128, h2=128):
    gain = jnp.sqrt(2.0)
    k1, k2, k3 = jax.random.split(key, 3)
    # PyTorch Linear weight is (out, in); we build the transposed (in, out).
    w1t = _orthogonal(k1, (obs_size, h1), gain)        # Linear(obs, h1).weight.T
    b1 = jnp.zeros((1, h1), jnp.float32)
    w2t = _orthogonal(k2, (h1 + act_size, h2), gain)   # Linear(h1+act, h2).weight.T
    w2o_t, w2a_t = w2t[:h1, :], w2t[h1:, :]
    b2 = jnp.zeros((1, h2), jnp.float32)
    w3t = _orthogonal(k3, (h2, 1), gain)               # Linear(h2, 1).weight.T
    b3 = jnp.zeros((1, 1), jnp.float32)
    return (w1t, b1, w2o_t, w2a_t, b2, w3t, b3)


def reference_forward(x, a, params, compute_dtype=jnp.float32):
    w1t, b1, w2o_t, w2a_t, b2, w3t, b3 = params
    cd = compute_dtype
    w2t = jnp.concatenate([w2o_t, w2a_t], axis=0)
    obs_out = jnp.maximum(
        jnp.dot(x.astype(cd), w1t.astype(cd),
                preferred_element_type=jnp.float32) + b1, 0.0)
    cat = jnp.concatenate([obs_out.astype(cd), a.astype(cd)], axis=1)
    h = jnp.maximum(
        jnp.dot(cat, w2t.astype(cd),
                preferred_element_type=jnp.float32) + b2, 0.0)
    return jnp.dot(h.astype(cd), w3t.astype(cd),
                   preferred_element_type=jnp.float32) + b3


# TODO(synk): sync_param / alpha_sync_param are host-side state_dict blends;
# they live outside the forward kernel (plain jnp ops on the param pytree).

if __name__ == "__main__":
    key = jax.random.PRNGKey(0)
    kx, ka, kp, kx2, ka2 = jax.random.split(key, 5)

    batch, obs_size, act_size = 8, 32, 8
    x = jax.random.normal(kx, (batch, obs_size), dtype=jnp.float32)
    a = jax.random.normal(ka, (batch, act_size), dtype=jnp.float32)
    params = init_params(kp, obs_size, act_size)
    kparams = prepare_kernel_params(params)          # one-time prep

    # Small-batch path: single grid step, block == full array, no padding.
    q = jax.block_until_ready(ddpg_critic_forward(x, a, kparams))
    assert q.shape == (batch, 1)
    q_ref_bf = reference_forward(x, a, params, compute_dtype=jnp.bfloat16)
    q_ref_f32 = reference_forward(x, a, params, compute_dtype=jnp.float32)
    assert jnp.allclose(q, q_ref_bf, atol=2e-2, rtol=2e-2), (q, q_ref_bf)
    assert jnp.allclose(q, q_ref_f32, atol=2.5e-1, rtol=1e-1), (q, q_ref_f32)

    # Replay-batch path, default tiling (one step on v5e/v6e, two on v7x).
    B2 = 300
    x2 = jax.random.normal(kx2, (B2, obs_size), dtype=jnp.float32)
    a2 = jax.random.normal(ka2, (B2, act_size), dtype=jnp.float32)
    q2 = jax.block_until_ready(ddpg_critic_forward(x2, a2, kparams))
    q2_ref = reference_forward(x2, a2, params, compute_dtype=jnp.bfloat16)
    assert q2.shape == (B2, 1)
    assert jnp.allclose(q2, q2_ref, atol=2e-2, rtol=2e-2), (q2, q2_ref)

    # Forced multi-tile path with a ragged last tile (exercises padding + grid).
    q3 = jax.block_until_ready(ddpg_critic_forward(x2, a2, kparams, tile_b=128))
    assert q3.shape == (B2, 1)
    assert jnp.allclose(q3, q2_ref, atol=2e-2, rtol=2e-2), (q3, q2_ref)

    print("KERNEL_OK")
</pallas_src>

<mosaic_0001>
module attributes {stable_mosaic.version = 11 : i64} {
  func.func @_critic_kernel(%arg0: i32, %arg1: memref<8x32xf32, #tpu.memory_space<vmem>>, %arg2: memref<8x8xf32, #tpu.memory_space<vmem>>, %arg3: memref<32x128xbf16, #tpu.memory_space<vmem>>, %arg4: memref<1x128xf32, #tpu.memory_space<vmem>>, %arg5: memref<128x128xbf16, #tpu.memory_space<vmem>>, %arg6: memref<8x128xbf16, #tpu.memory_space<vmem>>, %arg7: memref<1x128xf32, #tpu.memory_space<vmem>>, %arg8: memref<1x128xbf16, #tpu.memory_space<vmem>>, %arg9: memref<1x1xf32, #tpu.memory_space<vmem>>, %arg10: memref<1x1x8xf32, #tpu.memory_space<vmem>>) attributes {dimension_semantics = [#tpu.dimension_semantics<parallel>], iteration_bounds = array<i64: 1>, scalar_prefetch = 0 : i64, scratch_operands = 0 : i64, tpu.core_type = #tpu.core_type<tc>, window_params = [{transform_indices = @transform_0, window_bounds = array<i64: 8, 32>}, {transform_indices = @transform_1, window_bounds = array<i64: 8, 8>}, {pipeline_mode = #tpu.pipeline_mode<synchronous>, transform_indices = @transform_2, window_bounds = array<i64: 32, 128>}, {pipeline_mode = #tpu.pipeline_mode<synchronous>, transform_indices = @transform_3, window_bounds = array<i64: 1, 128>}, {pipeline_mode = #tpu.pipeline_mode<synchronous>, transform_indices = @transform_4, window_bounds = array<i64: 128, 128>}, {pipeline_mode = #tpu.pipeline_mode<synchronous>, transform_indices = @transform_5, window_bounds = array<i64: 8, 128>}, {pipeline_mode = #tpu.pipeline_mode<synchronous>, transform_indices = @transform_6, window_bounds = array<i64: 1, 128>}, {pipeline_mode = #tpu.pipeline_mode<synchronous>, transform_indices = @transform_7, window_bounds = array<i64: 1, 128>}, {pipeline_mode = #tpu.pipeline_mode<synchronous>, transform_indices = @transform_8, window_bounds = array<i64: 1, 1>}, {transform_indices = @transform_9, window_bounds = array<i64: 1, 1, 8>}]} {
    %c0 = arith.constant 0 : index
    %c0_0 = arith.constant 0 : index
    %0 = vector.load %arg1[%c0, %c0_0] : memref<8x32xf32, #tpu.memory_space<vmem>>, vector<8x32xf32>
    %1 = arith.truncf %0 : vector<8x32xf32> to vector<8x32xbf16>
    %c0_1 = arith.constant 0 : index
    %c0_2 = arith.constant 0 : index
    %2 = vector.load %arg3[%c0_1, %c0_2] : memref<32x128xbf16, #tpu.memory_space<vmem>>, vector<32x128xbf16>
    %cst = arith.constant dense<0.000000e+00> : vector<8x128xf32>
    %3 = tpu.matmul %1, %2, %cst {dimension_numbers = #tpu.dot_dimension_numbers<[1], [0], [0], [1], [0, 0, 1, 1], [], []>} : vector<8x32xbf16>, vector<32x128xbf16>, vector<8x128xf32> -> vector<8x128xf32>
    %c0_3 = arith.constant 0 : index
    %c0_4 = arith.constant 0 : index
    %4 = vector.load %arg4[%c0_3, %c0_4] : memref<1x128xf32, #tpu.memory_space<vmem>>, vector<1x128xf32>
    %5 = vector.broadcast %4 : vector<1x128xf32> to vector<8x128xf32>
    %6 = arith.addf %3, %5 : vector<8x128xf32>
    %cst_5 = arith.constant 0.000000e+00 : f32
    %7 = vector.broadcast %cst_5 : f32 to vector<8x128xf32>
    %8 = arith.maximumf %6, %7 : vector<8x128xf32>
    %9 = arith.truncf %8 : vector<8x128xf32> to vector<8x128xbf16>
    %c0_6 = arith.constant 0 : index
    %c0_7 = arith.constant 0 : index
    %10 = vector.load %arg5[%c0_6, %c0_7] : memref<128x128xbf16, #tpu.memory_space<vmem>>, vector<128x128xbf16>
    %cst_8 = arith.constant dense<0.000000e+00> : vector<8x128xf32>
    %11 = tpu.matmul %9, %10, %cst_8 {dimension_numbers = #tpu.dot_dimension_numbers<[1], [0], [0], [1], [0, 0, 1, 1], [], []>} : vector<8x128xbf16>, vector<128x128xbf16>, vector<8x128xf32> -> vector<8x128xf32>
    %c0_9 = arith.constant 0 : index
    %c0_10 = arith.constant 0 : index
    %12 = vector.load %arg2[%c0_9, %c0_10] : memref<8x8xf32, #tpu.memory_space<vmem>>, vector<8x8xf32>
    %13 = arith.truncf %12 : vector<8x8xf32> to vector<8x8xbf16>
    %c0_11 = arith.constant 0 : index
    %c0_12 = arith.constant 0 : index
    %14 = vector.load %arg6[%c0_11, %c0_12] : memref<8x128xbf16, #tpu.memory_space<vmem>>, vector<8x128xbf16>
    %cst_13 = arith.constant dense<0.000000e+00> : vector<8x128xf32>
    %15 = tpu.matmul %13, %14, %cst_13 {dimension_numbers = #tpu.dot_dimension_numbers<[1], [0], [0], [1], [0, 0, 1, 1], [], []>} : vector<8x8xbf16>, vector<8x128xbf16>, vector<8x128xf32> -> vector<8x128xf32>
    %16 = arith.addf %11, %15 : vector<8x128xf32>
    %c0_14 = arith.constant 0 : index
    %c0_15 = arith.constant 0 : index
    %17 = vector.load %arg7[%c0_14, %c0_15] : memref<1x128xf32, #tpu.memory_space<vmem>>, vector<1x128xf32>
    %18 = vector.broadcast %17 : vector<1x128xf32> to vector<8x128xf32>
    %19 = arith.addf %16, %18 : vector<8x128xf32>
    %cst_16 = arith.constant 0.000000e+00 : f32
    %20 = vector.broadcast %cst_16 : f32 to vector<8x128xf32>
    %21 = arith.maximumf %19, %20 : vector<8x128xf32>
    %c0_17 = arith.constant 0 : index
    %c0_18 = arith.constant 0 : index
    %22 = vector.load %arg8[%c0_17, %c0_18] : memref<1x128xbf16, #tpu.memory_space<vmem>>, vector<1x128xbf16>
    %23 = arith.truncf %21 : vector<8x128xf32> to vector<8x128xbf16>
    %cst_19 = arith.constant dense<0.000000e+00> : vector<1x8xf32>
    %24 = tpu.matmul %22, %23, %cst_19 {dimension_numbers = #tpu.dot_dimension_numbers<[1], [1], [0], [0], [0, 0, 1, 0], [], []>} : vector<1x128xbf16>, vector<8x128xbf16>, vector<1x8xf32> -> vector<1x8xf32>
    %c0_20 = arith.constant 0 : index
    %c0_21 = arith.constant 0 : index
    %25 = vector.load %arg9[%c0_20, %c0_21] : memref<1x1xf32, #tpu.memory_space<vmem>>, vector<1x1xf32>
    %26 = vector.broadcast %25 : vector<1x1xf32> to vector<1x8xf32>
    %27 = arith.addf %24, %26 : vector<1x8xf32>
    %28 = vector.shape_cast %27 : vector<1x8xf32> to vector<1x1x8xf32>
    %c0_22 = arith.constant 0 : index
    %c0_23 = arith.constant 0 : index
    %c0_24 = arith.constant 0 : index
    %29 = vector.load %arg10[%c0_22, %c0_23, %c0_24] : memref<1x1x8xf32, #tpu.memory_space<vmem>>, vector<1x1x8xf32>
    tpu.vector_store %arg10[%c0_22, %c0_23, %c0_24], %28 {strides = array<i32>} : memref<1x1x8xf32, #tpu.memory_space<vmem>>, vector<1x1x8xf32>,
    return
  }
  func.func @transform_0(%arg0: i32) -> (i32, i32) {
    %c0_i32 = arith.constant 0 : i32
    %c0_i32_0 = arith.constant 0 : i32
    return %arg0, %c0_i32 : i32, i32
  }
  func.func @transform_1(%arg0: i32) -> (i32, i32) {
    %c0_i32 = arith.constant 0 : i32
    %c0_i32_0 = arith.constant 0 : i32
    return %arg0, %c0_i32 : i32, i32
  }
  func.func @transform_2(%arg0: i32) -> (i32, i32) {
    %c0_i32 = arith.constant 0 : i32
    %c0_i32_0 = arith.constant 0 : i32
    %c0_i32_1 = arith.constant 0 : i32
    return %c0_i32, %c0_i32_0 : i32, i32
  }
  func.func @transform_3(%arg0: i32) -> (i32, i32) {
    %c0_i32 = arith.constant 0 : i32
    %c0_i32_0 = arith.constant 0 : i32
    %c0_i32_1 = arith.constant 0 : i32
    return %c0_i32, %c0_i32_0 : i32, i32
  }
  func.func @transform_4(%arg0: i32) -> (i32, i32) {
    %c0_i32 = arith.constant 0 : i32
    %c0_i32_0 = arith.constant 0 : i32
    %c0_i32_1 = arith.constant 0 : i32
    return %c0_i32, %c0_i32_0 : i32, i32
  }
  func.func @transform_5(%arg0: i32) -> (i32, i32) {
    %c0_i32 = arith.constant 0 : i32
    %c0_i32_0 = arith.constant 0 : i32
    %c0_i32_1 = arith.constant 0 : i32
    return %c0_i32, %c0_i32_0 : i32, i32
  }
  func.func @transform_6(%arg0: i32) -> (i32, i32) {
    %c0_i32 = arith.constant 0 : i32
    %c0_i32_0 = arith.constant 0 : i32
    %c0_i32_1 = arith.constant 0 : i32
    return %c0_i32, %c0_i32_0 : i32, i32
  }
  func.func @transform_7(%arg0: i32) -> (i32, i32) {
    %c0_i32 = arith.constant 0 : i32
    %c0_i32_0 = arith.constant 0 : i32
    %c0_i32_1 = arith.constant 0 : i32
    return %c0_i32, %c0_i32_0 : i32, i32
  }
  func.func @transform_8(%arg0: i32) -> (i32, i32) {
    %c0_i32 = arith.constant 0 : i32
    %c0_i32_0 = arith.constant 0 : i32
    %c0_i32_1 = arith.constant 0 : i32
    return %c0_i32, %c0_i32_0 : i32, i32
  }
  func.func @transform_9(%arg0: i32) -> (i32, i32, i32) {
    %c0_i32 = arith.constant 0 : i32
    %c0_i32_0 = arith.constant 0 : i32
    %c0_i32_1 = arith.constant 0 : i32
    return %arg0, %c0_i32, %c0_i32_0 : i32, i32, i32
  }
}

</mosaic_0001>

<bundles_post_ra>
// kernel: tpu_custom_call.1
= control target key start
LH: loop header
LB: loop body
LE: loop exit
PB: predicated region body
PF: predicated region fallthrough
CT: control target
= control target key end

     0   :  { %s565_s0 = inlined_call_operand.hbm [shape: f32[8,32], index: 0, kind: input, shape index: {}]   ;;  %s566_s1 = inlined_call_operand.hbm [shape: f32[8,8], index: 1, kind: input, shape index: {}]   ;;  %s567_s2 = inlined_call_operand.hbm [shape: bf16[32,128], index: 2, kind: input, shape index: {}]   ;;  %s568_s3 = inlined_call_operand.vmem [shape: f32[1,128], index: 3, kind: input, shape index: {}]   ;;  %s569_s4 = inlined_call_operand.hbm [shape: bf16[128,128], index: 4, kind: input, shape index: {}]   ;;  %s570_s5 = inlined_call_operand.vmem [shape: bf16[8,128], index: 5, kind: input, shape index: {}]   ;;  %s571_s6 = inlined_call_operand.vmem [shape: f32[1,128], index: 6, kind: input, shape index: {}]   ;;  %s572_s7 = inlined_call_operand.vmem [shape: bf16[1,128], index: 7, kind: input, shape index: {}]   ;;  %s573_s8 = inlined_call_operand.<no memory space> [shape: f32[1,1], index: 8, kind: input, shape index: {}]   ;;  %s574_s9 = inlined_call_operand.hbm [shape: f32[1,1,8], index: 9, kind: output, shape index: {}]  }
   0x1   :  { %v14_v0 = vstv %s573_s8 }
   0x2   :  { %15 = vst [vmem:[#allocation2] sm:$0x1] %v14_v0 }
   0x3   :  { %16 = vsyncpa [#allocation4], 0 }
   0x4   :  { %17 = vsyncpa [#allocation7], 0 }
   0x5   :  { %18 = vsyncpa [#allocation10], 0  ;;  %s36_s13 = sshll.u32 %s566_s1, 4  ;;  %s37_s13 = int_to_ptr.hbm [resolvable:$true] %s36_s13 }
   0x6   :  { %19 = vsyncpa [#allocation5], 0  ;;  %s477_s14 = smov [#allocation6]   ;;  %s25_s18 = sshll.u32 %s565_s0, 4  ;;  %s26_s18 = int_to_ptr.hbm [resolvable:$true] %s25_s18 }
   0x7   :  { %s38_s15 = sshll.u32 %s477_s14, 4  ;;  %s478_s8 = smov [#allocation3]   ;;  %s39_s15 = int_to_ptr.vmem [resolvable:$true] %s38_s15 }
   0x8   :  { %41 = dma.hbm_to_vmem [thread:$0]  %s37_s13, 128, %s39_s15, [#allocation7]  }
   0x9   :  { %s27_s19 = sshll.u32 %s478_s8, 4  ;;  %s46_s22 = sshll.u32 %s567_s2, 4  ;;  %s28_s19 = int_to_ptr.vmem [resolvable:$true] %s27_s19  ;;  %s47_s22 = int_to_ptr.hbm [resolvable:$true] %s46_s22 }
   0xa   :  { %30 = dma.hbm_to_vmem [thread:$0]  %s26_s18, 128, %s28_s19, [#allocation4]  }
   0xb   :  { %s479_s1 = smov [#allocation8]   ;;  %s61_s26 = sshll.u32 %s569_s4, 4  ;;  %s62_s26 = int_to_ptr.hbm [resolvable:$true] %s61_s26 }
   0xc   :  { %s48_s23 = sshll.u32 %s479_s1, 4  ;;  %s480_s27 = smov 64   ;;  %s49_s23 = int_to_ptr.vmem [resolvable:$true] %s48_s23 }
   0xd   :  { %s481_s0 = smov 4   ;;  %s482_s28 = smov [#allocation9]  }
   0xe   :  { %54 = dma.hbm_to_vmem [thread:$0]  %s47_s22, 256, %s49_s23, [#allocation7], %s480_s27, %s480_s27, %s481_s0  }
   0xf   :  { %s63_s29 = sshll.u32 %s482_s28, 4  ;;  %s64_s29 = int_to_ptr.vmem [resolvable:$true] %s63_s29 }
  0x10   :  { %69 = dma.hbm_to_vmem [thread:$0]  %s62_s26, 1024, %s64_s29, [#allocation10], %s480_s27, %s480_s27, %s481_s0  }
  0x11   :  { %469 = dma.done.wait [#allocation4], 128  }
  0x12   :  { %470 = vsyncadd [#allocation4], 4294967168 }
  0x13   :  { %471 = dma.done.wait [#allocation7], 384  }
  0x14   :  { %472 = vsyncadd [#allocation7], 4294966912 }
  0x15   :  { %473 = dma.done.wait [#allocation10], 1024  }
  0x16   :  { %474 = vsyncadd [#allocation10], 4294966272  ;;  %v329_v1 = vld [vmem:[#allocation8 + $0x8] sm:$0xff]  ;;  %v328_v3 = vld [vmem:[#allocation8] sm:$0xff]  ;;  %vm117_vm0 = vcmask 261120   ;;  %vm159_vm1 = vcmask 1043456  }
  0x17   :  { %v337_v2 = vld [vmem:[#allocation9 + $0x38] sm:$0xff]  ;;  %127 = vmatpush.bf16.msra.mxu0 %v329_v1  ;;  %v95_v4 = vld [vmem:[#allocation3] sm:$0xff]  ;;  %v336_v5 = vld [vmem:[#allocation9 + $0x30] sm:$0xff]  ;;  %vm155_vm2 = vcmask 64512   ;;  %v483_v26 = vmov 0   ;;  %s484_s13 = smov [#allocation11]  }
  0x18   :  { %224 = vmatpush.bf16.msra.mxu2 %v337_v2  ;;  %v96_v6 = vpack.c.bf16 %v95_v4, %v95_v4  ;;  %v335_v7 = vld [vmem:[#allocation9 + $0x28] sm:$0xff]  ;;  %v334_v8 = vld [vmem:[#allocation9 + $0x20] sm:$0xff]  ;;  %v333_v9 = vld [vmem:[#allocation9 + $0x18] sm:$0xff]  ;;  %346 = vset.pattern.permute.xlu0 %v483_v26  ;;  %s272_s14 = sshll.u32 %s484_s13, 4  ;;  %vm265_vm3 = vcmask 57344   ;;  %s273_s14 = int_to_ptr.vmem [resolvable:$true] %s272_s14 }
  0x19   :  { %v332_v10 = vld [vmem:[#allocation9 + $0x10] sm:$0xff]  ;;  %v331_v11 = vld [vmem:[#allocation9 + $0x8] sm:$0xff]  ;;  %v154_v12 = vld [vmem:[%s570_s5] sm:$0xf] }
  0x1a   :  { %v161_v13 = vsel %vm159_vm1, %v154_v12, 0  ;;  %v330_v14 = vld [vmem:[#allocation9] sm:$0xff]  ;;  %v152_v15 = vld [vmem:[#allocation6] sm:$0xff]  ;;  %v347_v17 = vld [vmem:[%s568_s3] ss:$0 sm:$0xff] }
  0x1b   :  { %128 = vmatpush.bf16.msra.mxu0 %v328_v3  ;;  %170 = vmatpush.bf16.msra.mxu1 %v161_v13  ;;  %v153_v16 = vpack.c.bf16 %v152_v15, %v152_v15  ;;  %v245_v25 = vld [vmem:[#allocation2] sm:$0x1] }
  0x1c   :  { %225 = vmatpush.bf16.msra.mxu2 %v336_v5  ;;  %248 = vperm.xlu0 %346, %v245_v25   ;;  %v348_v27 = vld [vmem:[%s571_s6] ss:$0 sm:$0xff]  ;;  %s274_s6 = sshll.u32 %s574_s9, 4  ;;  %s275_s6 = int_to_ptr.hbm [resolvable:$true] %s274_s6 }
  0x1d   :  { %v243_v34 = vld [vmem:[%s572_s7] sm:$0x1] }
  0x1e   :  { %294 = vmatmul.msk.bf16.vlgmr.msra.gmra.mxu0 %vm117_vm0, %v96_v6  ;;  %295 = vmatmul.msk.bf16.vlgmr.msra.gmra.mxu1 %vm155_vm2, %v153_v16 }
  0x20   :  { %226 = vmatpush.bf16.msra.mxu2 %v335_v7 }
  0x24   :  { %227 = vmatpush.bf16.msra.mxu2 %v334_v8 }
  0x28   :  { %228 = vmatpush.bf16.msra.mxu2 %v333_v9 }
  0x2c   :  { %229 = vmatpush.bf16.msra.mxu2 %v332_v10 }
  0x30   :  { %230 = vmatpush.bf16.msra.mxu2 %v331_v11 }
  0x34   :  { %231 = vmatpush.bf16.msra.mxu2 %v330_v14 }
  0x8e   :  { %v249_v35 = vpop.permute.xlu0 %248 }
  0x8f   :  { %v251_v36 = vperm.slane %v249_v35, 0 }
  0x9b   :  { %v130_v18 = vpop.f32.mrf.mxu0  ;;  %v172_v23 = vpop.f32.mrf.mxu1 }
  0x9c   :  { %v131_v19 = vadd.f32 %v347_v17, %v130_v18 }
  0x9e   :  { %v134_v20 = vmax.f32 %v131_v19, 0.0 }
  0xa0   :  { %v135_v21 = vpack.c.bf16 %v134_v20, %v134_v20 }
  0xa2   :  { %232 = vmatmul.bf16.vlgmr.msra.gmra.mxu2 %v135_v21 }
  0xa3   :  { %v132_v22 = vpop.f32.mrf.mxu0  ;;  %v174_v24 = vpop.f32.mrf.mxu1 }
 0x125   :  { %v233_v28 = vpop.f32.mrf.mxu2 }
 0x126   :  { %v234_v29 = vadd.f32 %v233_v28, %v172_v23 }
 0x128   :  { %v241_v30 = vadd.f32 %v348_v27, %v234_v29 }
 0x12a   :  { %v242_v31 = vmax.f32 %v241_v30, 0.0 }
 0x12c   :  { %v244_v32 = vpack.c.bf16 %v242_v31, %v242_v31 }
 0x12d   :  { %v235_v33 = vpop.f32.mrf.mxu2 }
 0x12e   :  { %259 = vmatpush.bf16.xpose.msra.mxu3 %v244_v32 }
 0x135   :  { %260 = vmatmul.bf16.vlgmr.msra.gmra.mxu3 %v243_v34 }
 0x1b8   :  { %v261_v37 = vpop.f32.mrf.mxu3 }
 0x1b9   :  { %v262_v38 = vadd.f32 %v261_v37, %v251_v36 }
 0x1bb   :  { %266 = vst.msk [vmem:[#allocation11] sm:$0x1] %vm265_vm3, %v262_v38 }
 0x1bc   :  { %277 = dma.vmem_to_hbm [thread:$0]  %s273_s14, 16, %s275_s6, [#allocation5]  }
 0x1c0   :  { %v263_v39 = vpop.f32.mrf.mxu3 }
 0x1c1   :  { %475 = dma.done.wait [#allocation5], 16  }
 0x1c2   :  { %476 = vsyncadd [#allocation5], 4294967280 }
 0x1c3   :  { %282 = vsyncpa [#allocation4], 1 }
 0x1c4   :  { %283 = vsyncpa [#allocation7], 1 }
 0x1c5   :  { %284 = vsyncpa [#allocation10], 1 }
 0x1c6   :  { %285 = vsyncpa [#allocation5], 1 }

</bundles_post_ra>
